<compile_context>
chip_gen: v6e
topology: v6e:2x2x1
jax: 0.10.0
libtpu: 0.0.40
codegen_flags: <defaults>
</compile_context>

<pallas_src>
import functools

import jax
import jax.numpy as jnp
from jax.experimental import pallas as pl
from jax.experimental.pallas import tpu as pltpu

BN_EPS = 1e-5
LANE = 128          # lane-dense hidden padding (hidden=32 -> hp=128)
SUB = 16            # sublane alignment
TN_MAX = 512        # max node-tile rows
TE_MAX = 2048       # max edge-tile rows (reduction axis)

# ogb feature dims (get_atom_feature_dims / get_bond_feature_dims)
ATOM_FEATURE_DIMS = [119, 4, 12, 12, 10, 6, 6, 2, 2]
BOND_FEATURE_DIMS = [5, 6, 2]


def _vmem_limit_bytes():
    """~75% of physical VMEM (v5e/v6e -> ~96 MiB, v7x -> ~48 MiB), clamped to [32, 100] MiB."""
    try:
        cap = int(pltpu.get_tpu_info().vmem_capacity_bytes)
    except Exception:                       # interpret mode / query unavailable: v7x-safe default
        cap = 64 * 1024 * 1024
    return max(32 * 1024 * 1024, min(100 * 1024 * 1024, (cap * 3) // 4))


VMEM_LIMIT = _vmem_limit_bytes()


# ------------------------------------------------------------------ small helpers
def _round_up(x, m):
    return (x + m - 1) // m * m


def _cdiv(a, b):
    return (a + b - 1) // b


def _node_tiles(n):
    """(n_pad, tn). Guarantees >=2 node tiles for medium/large graphs so the 'parallel'
    grid axis can shard across v7x's two TensorCores."""
    n_pad = _round_up(max(n, 1), SUB)
    if n_pad <= 256:
        return n_pad, n_pad                     # tiny graph: one full-extent tile
    if n_pad <= TN_MAX:
        tn = _round_up(_cdiv(n_pad, 2), 128)    # two tiles
        return _round_up(n_pad, tn), tn
    return _round_up(n_pad, TN_MAX), TN_MAX


def _edge_tiles(e):
    e_pad = _round_up(max(e, 1), SUB)
    if e_pad <= TE_MAX:
        return e_pad, e_pad
    return _round_up(e_pad, TE_MAX), TE_MAX


def _pad2(a, rows, cols):
    return jnp.pad(a, ((0, rows - a.shape[0]), (0, cols - a.shape[1])))


# ------------------------------------------------------------------ Pallas kernels
def gin_layer_kernel(eps_ref, h_ref, msg_ref, dst_ref,
                     w1_ref, b1_ref, w2_ref, b2_ref,
                     out_ref, acc_ref, *, apply_relu):
    """Fused GIN layer (eval mode, BatchNorm folded into the linears).

    grid = (node_tiles [parallel], edge_tiles [arbitrary reduction])
      agg[n] = sum_{e: dst[e]==n} msg[e]    (one-hot built in-kernel, bf16 MXU matmul)
      out    = ReLU?( BN_layer( Lin2( ReLU( BN1( Lin1( (1+eps)*h + agg ))))))
    """
    i = pl.program_id(0)
    k = pl.program_id(1)
    tn = h_ref.shape[0]
    te = msg_ref.shape[0]

    @pl.when(k == 0)
    def _():
        acc_ref[...] = jnp.zeros_like(acc_ref)

    # In-kernel scatter one-hot: VPU compare, exact 0/1, no O(N*E) HBM stream.
    local_dst = dst_ref[...] - i * tn                                 # [1, te] int32
    row_ids = jax.lax.broadcasted_iota(jnp.int32, (tn, te), 0)        # [tn, te]
    scat = (row_ids == local_dst).astype(jnp.bfloat16)                # [tn, te]
    # bf16 x bf16 MXU matmul, f32 accumulation (msg is already bf16).
    acc_ref[...] += jnp.dot(scat, msg_ref[...], preferred_element_type=jnp.float32)

    @pl.when(k == pl.num_programs(1) - 1)
    def _():
        eps = eps_ref[0, 0]                                           # SMEM scalar
        xin = (1.0 + eps) * h_ref[...] + acc_ref[...]
        h1 = jnp.dot(xin.astype(jnp.bfloat16), w1_ref[...],
                     preferred_element_type=jnp.float32) + b1_ref[...]
        h1 = jnp.maximum(h1, 0.0)                                     # BN1 folded into w1/b1
        h2 = jnp.dot(h1.astype(jnp.bfloat16), w2_ref[...],
                     preferred_element_type=jnp.float32) + b2_ref[...]
        if apply_relu:                                                # layer-BN folded into w2/b2
            h2 = jnp.maximum(h2, 0.0)
        out_ref[...] = h2


def vn_update_kernel(gid_ref, h_ref, vn_ref, w1_ref, b1_ref, w2_ref, b2_ref,
                     out_ref, acc_ref):
    """vn_new = ReLU(Lin2'(ReLU(Lin1'(global_add_pool(h, batch) + vn))))   (BN folded).

    grid = (node_tiles,) [arbitrary]: pool accumulated per tile, tiny MLP on the last tile.
    """
    j = pl.program_id(0)
    g_pad = acc_ref.shape[0]
    tn = h_ref.shape[0]

    @pl.when(j == 0)
    def _():
        acc_ref[...] = jnp.zeros_like(acc_ref)

    # In-kernel pool one-hot from per-node graph ids (padded nodes carry an OOB id -> zero row).
    graph_ids = jax.lax.broadcasted_iota(jnp.int32, (g_pad, tn), 0)
    pool = (graph_ids == gid_ref[...]).astype(jnp.bfloat16)           # [g_pad, tn]
    acc_ref[...] += jnp.dot(pool, h_ref[...].astype(jnp.bfloat16),
                            preferred_element_type=jnp.float32)

    @pl.when(j == pl.num_programs(0) - 1)
    def _():
        t = acc_ref[...] + vn_ref[...]
        h1 = jnp.maximum(jnp.dot(t.astype(jnp.bfloat16), w1_ref[...],
                                 preferred_element_type=jnp.float32) + b1_ref[...], 0.0)
        out_ref[...] = jnp.maximum(
            jnp.dot(h1.astype(jnp.bfloat16), w2_ref[...],
                    preferred_element_type=jnp.float32) + b2_ref[...], 0.0)


# ------------------------------------------------------------------ pallas_call wrappers
def _gin_layer_call(eps, h_in, msg, dst, w1, b1, w2, b2,
                    n_pad, tn, e_pad, te, hp, apply_relu):
    grid = (n_pad // tn, e_pad // te)
    kern = functools.partial(gin_layer_kernel, apply_relu=apply_relu)
    return pl.pallas_call(
        kern,
        out_shape=jax.ShapeDtypeStruct((n_pad, hp), jnp.float32),
        grid=grid,
        in_specs=[
            pl.BlockSpec(memory_space=pltpu.MemorySpace.SMEM),       # eps (1,1) scalar
            pl.BlockSpec((tn, hp), lambda i, k: (i, 0)),             # h_in (f32)
            pl.BlockSpec((te, hp), lambda i, k: (k, 0)),             # msg (bf16)
            pl.BlockSpec((1, te), lambda i, k: (0, k)),              # dst ids (int32)
            pl.BlockSpec((hp, 2 * hp), lambda i, k: (0, 0)),         # w1 (bf16, BN1 folded)
            pl.BlockSpec((1, 2 * hp), lambda i, k: (0, 0)),          # b1 (f32)
            pl.BlockSpec((2 * hp, hp), lambda i, k: (0, 0)),         # w2 (bf16, layer BN folded)
            pl.BlockSpec((1, hp), lambda i, k: (0, 0)),              # b2 (f32)
        ],
        out_specs=pl.BlockSpec((tn, hp), lambda i, k: (i, 0)),
        scratch_shapes=[pltpu.VMEM((tn, hp), jnp.float32)],
        compiler_params=pltpu.CompilerParams(
            dimension_semantics=("parallel", "arbitrary"),
            vmem_limit_bytes=VMEM_LIMIT),
    )(eps, h_in, msg, dst, w1, b1, w2, b2)


def _vn_update_call(gid, h_in, vn, w1, b1, w2, b2, n_pad, tn, g_pad, hp):
    grid = (n_pad // tn,)
    return pl.pallas_call(
        vn_update_kernel,
        out_shape=jax.ShapeDtypeStruct((g_pad, hp), jnp.float32),
        grid=grid,
        in_specs=[
            pl.BlockSpec((1, tn), lambda j: (0, j)),                 # graph ids (int32)
            pl.BlockSpec((tn, hp), lambda j: (j, 0)),                # h_in (f32)
            pl.BlockSpec((g_pad, hp), lambda j: (0, 0)),             # vn (f32)
            pl.BlockSpec((hp, 2 * hp), lambda j: (0, 0)),            # w1 (bf16)
            pl.BlockSpec((1, 2 * hp), lambda j: (0, 0)),             # b1 (f32)
            pl.BlockSpec((2 * hp, hp), lambda j: (0, 0)),            # w2 (bf16)
            pl.BlockSpec((1, hp), lambda j: (0, 0)),                 # b2 (f32)
        ],
        out_specs=pl.BlockSpec((g_pad, hp), lambda j: (0, 0)),
        scratch_shapes=[pltpu.VMEM((g_pad, hp), jnp.float32)],
        compiler_params=pltpu.CompilerParams(
            dimension_semantics=("arbitrary",),
            vmem_limit_bytes=VMEM_LIMIT),
    )(gid, h_in, vn, w1, b1, w2, b2)


# ------------------------------------------------------------------ parameter init (torch-like)
def _xavier_uniform(key, shape):
    fan_in, fan_out = shape[0], shape[1]
    bound = (6.0 / (fan_in + fan_out)) ** 0.5
    return jax.random.uniform(key, shape, jnp.float32, -bound, bound)


def _linear_params(key, in_dim, out_dim):
    kw, kb = jax.random.split(key)
    bound = 1.0 / (in_dim ** 0.5)
    w = jax.random.uniform(kw, (in_dim, out_dim), jnp.float32, -bound, bound)  # [in, out]
    b = jax.random.uniform(kb, (1, out_dim), jnp.float32, -bound, bound)
    return w, b


def _bn_params(dim):
    # (gamma, beta, running_mean, running_var) — PyTorch BatchNorm1d defaults
    return (jnp.ones((1, dim), jnp.float32), jnp.zeros((1, dim), jnp.float32),
            jnp.zeros((1, dim), jnp.float32), jnp.ones((1, dim), jnp.float32))


def init_gnn_virtualnode(key, num_layer, hidden):
    keys = iter(jax.random.split(key, 4 * num_layer + len(ATOM_FEATURE_DIMS)
                                  + num_layer * len(BOND_FEATURE_DIMS) + 16))
    params = {}
    params["atom_emb"] = [_xavier_uniform(next(keys), (d, hidden)) for d in ATOM_FEATURE_DIMS]
    convs = []
    for _ in range(num_layer):
        conv = {}
        conv["bond_emb"] = [_xavier_uniform(next(keys), (d, hidden)) for d in BOND_FEATURE_DIMS]
        conv["w1"], conv["b1"] = _linear_params(next(keys), hidden, 2 * hidden)
        conv["bn1"] = _bn_params(2 * hidden)
        conv["w2"], conv["b2"] = _linear_params(next(keys), 2 * hidden, hidden)
        conv["eps"] = jnp.zeros((1, 1), jnp.float32)  # GIN eps init 0
        convs.append(conv)
    params["convs"] = convs
    params["batch_norms"] = [_bn_params(hidden) for _ in range(num_layer)]
    vn_mlps = []
    for _ in range(num_layer - 1):
        m = {}
        m["w1"], m["b1"] = _linear_params(next(keys), hidden, 2 * hidden)
        m["bn1"] = _bn_params(2 * hidden)
        m["w2"], m["b2"] = _linear_params(next(keys), 2 * hidden, hidden)
        m["bn2"] = _bn_params(hidden)
        vn_mlps.append(m)
    params["vn_mlps"] = vn_mlps
    return params


# ------------------------------------------------------------------ parameter preparation
def _fold_bn(w, b, bn):
    """Fold eval-mode BatchNorm1d following Linear(w, b): y = x @ wf + bf."""
    g, beta, mean, var = bn
    scale = g * jax.lax.rsqrt(var + BN_EPS)
    return w * scale, (b - mean) * scale + beta


def _renorm_rows(tbl):
    # torch Embedding(max_norm=1) renormalizes rows with L2 norm > 1 at lookup time
    norm = jnp.sqrt(jnp.sum(tbl * tbl, axis=1, keepdims=True))
    return jnp.where(norm > 1.0, tbl / (norm + 1e-7), tbl)


def prepare_params(params, hidden):
    """Eval-mode prep: hoist embedding renorm, fold BN into linears, pad hidden to 128,
    store folded weights bf16 (biases stay f32)."""
    hp = _round_up(hidden, LANE)
    prep = {}
    prep["atom_emb"] = [_pad2(_renorm_rows(t), t.shape[0], hp) for t in params["atom_emb"]]

    convs = []
    for layer, conv in enumerate(params["convs"]):
        w1f, b1f = _fold_bn(conv["w1"], conv["b1"], conv["bn1"])                  # GIN MLP BN
        w2f, b2f = _fold_bn(conv["w2"], conv["b2"], params["batch_norms"][layer])  # layer BN
        convs.append({
            "bond_emb": [_pad2(_renorm_rows(t), t.shape[0], hp) for t in conv["bond_emb"]],
            "eps": conv["eps"],
            "w1": _pad2(w1f, hp, 2 * hp).astype(jnp.bfloat16),
            "b1": _pad2(b1f, 1, 2 * hp),
            "w2": _pad2(w2f, 2 * hp, hp).astype(jnp.bfloat16),
            "b2": _pad2(b2f, 1, hp),
        })
    prep["convs"] = convs

    vn_mlps = []
    for m in params["vn_mlps"]:
        w1f, b1f = _fold_bn(m["w1"], m["b1"], m["bn1"])
        w2f, b2f = _fold_bn(m["w2"], m["b2"], m["bn2"])
        vn_mlps.append({"w1": _pad2(w1f, hp, 2 * hp).astype(jnp.bfloat16),
                        "b1": _pad2(b1f, 1, 2 * hp),
                        "w2": _pad2(w2f, 2 * hp, hp).astype(jnp.bfloat16),
                        "b2": _pad2(b2f, 1, hp)})
    prep["vn_mlps"] = vn_mlps
    return prep


# ------------------------------------------------------------------ embedding lookups (XLA gathers)
def _embed_sum(tables, idx):
    """Sum of (pre-renormalized, hidden-padded) Embedding lookups over feature columns."""
    out = jnp.take(tables[0], idx[:, 0], axis=0)
    for i in range(1, len(tables)):
        out = out + jnp.take(tables[i], idx[:, i], axis=0)
    return out


# ------------------------------------------------------------------ forward (Pallas path)
def gnn_node_virtualnode_forward(prep, x, edge_index, edge_attr, batch, num_graphs,
                                 num_layer, hidden, jk="last"):
    n = x.shape[0]
    e = edge_index.shape[1]
    g = num_graphs
    hp = _round_up(hidden, LANE)          # static (derived from the static `hidden` arg)

    n_pad, tn = _node_tiles(n)
    e_pad, te = _edge_tiles(e)
    g_pad = _round_up(g, 8)

    src = edge_index[0]
    # Padded edges point at an out-of-range node id (scatter mask row never matches);
    # padded nodes point at an out-of-range graph id (pool row never matches, vn gather fills 0).
    dst_oob = jnp.pad(edge_index[1], (0, e_pad - e), constant_values=n_pad).reshape(1, e_pad)
    gid_oob = jnp.pad(batch, (0, n_pad - n), constant_values=g_pad).reshape(1, n_pad)
    batch_take = jnp.pad(batch, (0, n_pad - n), constant_values=g_pad)

    vn = jnp.zeros((g_pad, hp), jnp.float32)                     # virtualnode_embedding init = 0
    h0 = _embed_sum(prep["atom_emb"], x)                         # atom encoder [n, hp]
    h_pad = [jnp.pad(h0, ((0, n_pad - n), (0, 0)))]

    for layer in range(num_layer):
        conv = prep["convs"][layer]

        # h = h + virtualnode_embedding[batch]  (padded node rows get 0 via mode='fill')
        h_in = h_pad[layer] + jnp.take(vn, batch_take, axis=0, mode="fill", fill_value=0.0)
        h_pad[layer] = h_in

        # Edge message relu(h[src] + edge_emb): computed once per layer, streamed bf16.
        edge_emb = _embed_sum(conv["bond_emb"], edge_attr)       # bond encoder [e, hp]
        msg = jnp.maximum(jnp.take(h_in, src, axis=0) + edge_emb, 0.0).astype(jnp.bfloat16)
        msg = jnp.pad(msg, ((0, e_pad - e), (0, 0)))

        last = layer == num_layer - 1
        h_out = _gin_layer_call(conv["eps"], h_in, msg, dst_oob,
                                conv["w1"], conv["b1"], conv["w2"], conv["b2"],
                                n_pad, tn, e_pad, te, hp, apply_relu=not last)
        # TODO(synk): F.dropout left as eval-mode identity (deterministic forward).
        h_pad.append(h_out)

        if not last:
            m = prep["vn_mlps"][layer]
            vn = _vn_update_call(gid_oob, h_in, vn, m["w1"], m["b1"], m["w2"], m["b2"],
                                 n_pad, tn, g_pad, hp)

    h_list = [h[:n, :hidden] for h in h_pad]
    if jk == "last":
        node_representation = h_list[-1]
    elif jk == "sum":
        node_representation = sum(h_list)
    else:
        raise ValueError(f"unsupported JK: {jk}")
    return node_representation, h_list


# ------------------------------------------------------------------ pure-JAX f32 reference
def _bn_apply(h, bn):
    g, b, m, v = bn
    return (h - m) * g * jax.lax.rsqrt(v + BN_EPS) + b


def _embed_sum_raw(tables, idx):
    out = _renorm_rows(tables[0])[idx[:, 0]]
    for i in range(1, len(tables)):
        out = out + _renorm_rows(tables[i])[idx[:, i]]
    return out


def reference_forward(params, x, edge_index, edge_attr, batch, num_graphs,
                      num_layer, hidden, jk="last"):
    """Eval-mode f32 reference (no padding, no bf16, no BN folding)."""
    n = x.shape[0]
    src, dst = edge_index[0], edge_index[1]
    vn = jnp.zeros((num_graphs, hidden), jnp.float32)
    h_list = [_embed_sum_raw(params["atom_emb"], x)]
    for layer in range(num_layer):
        conv = params["convs"][layer]
        h_in = h_list[layer] + vn[batch]
        h_list[layer] = h_in
        edge_emb = _embed_sum_raw(conv["bond_emb"], edge_attr)
        msg = jnp.maximum(h_in[src] + edge_emb, 0.0)
        agg = jnp.zeros((n, hidden), jnp.float32).at[dst].add(msg)
        xin = (1.0 + conv["eps"][0, 0]) * h_in + agg
        h1 = jnp.maximum(_bn_apply(xin @ conv["w1"] + conv["b1"], conv["bn1"]), 0.0)
        h = _bn_apply(h1 @ conv["w2"] + conv["b2"], params["batch_norms"][layer])
        if layer < num_layer - 1:
            h = jnp.maximum(h, 0.0)
        h_list.append(h)
        if layer < num_layer - 1:
            m = params["vn_mlps"][layer]
            pooled = jnp.zeros((num_graphs, hidden), jnp.float32).at[batch].add(h_in) + vn
            t1 = jnp.maximum(_bn_apply(pooled @ m["w1"] + m["b1"], m["bn1"]), 0.0)
            vn = jnp.maximum(_bn_apply(t1 @ m["w2"] + m["b2"], m["bn2"]), 0.0)
    node_representation = h_list[-1] if jk == "last" else sum(h_list)
    return node_representation, h_list


# ------------------------------------------------------------------ main
if __name__ == "__main__":
    key = jax.random.PRNGKey(0)
    num_layer, hidden = 2, 32
    n_nodes, n_edges, n_graphs = 16, 32, 2

    kp, kx, ke, ks, kd = jax.random.split(key, 5)
    params = init_gnn_virtualnode(kp, num_layer, hidden)
    prep = prepare_params(params, hidden)

    # categorical atom features [N, 9]
    x = jnp.stack(
        [jax.random.randint(jax.random.fold_in(kx, i), (n_nodes,), 0, d)
         for i, d in enumerate(ATOM_FEATURE_DIMS)], axis=1).astype(jnp.int32)
    # categorical bond features [E, 3]
    edge_attr = jnp.stack(
        [jax.random.randint(jax.random.fold_in(ke, i), (n_edges,), 0, d)
         for i, d in enumerate(BOND_FEATURE_DIMS)], axis=1).astype(jnp.int32)

    # two graphs of 8 nodes each; edges stay within a graph
    batch = jnp.concatenate([jnp.zeros(8, jnp.int32), jnp.ones(8, jnp.int32)])
    src0 = jax.random.randint(ks, (n_edges // 2,), 0, 8)
    dst0 = jax.random.randint(kd, (n_edges // 2,), 0, 8)
    edge_index = jnp.stack([jnp.concatenate([src0, src0 + 8]),
                            jnp.concatenate([dst0, dst0 + 8])]).astype(jnp.int32)

    fwd = jax.jit(functools.partial(gnn_node_virtualnode_forward,
                                    num_graphs=n_graphs, num_layer=num_layer,
                                    hidden=hidden, jk="last"))
    node_rep, h_list = fwd(prep, x, edge_index, edge_attr, batch)
    jax.block_until_ready(node_rep)

    assert node_rep.shape == (n_nodes, hidden)
    assert len(h_list) == num_layer + 1
    assert bool(jnp.all(jnp.isfinite(node_rep)))

    # Loose check vs the f32 reference (kernel intentionally uses bf16 MXU operands).
    ref_node, _ = reference_forward(params, x, edge_index, edge_attr, batch,
                                    n_graphs, num_layer, hidden, jk="last")
    err = float(jnp.max(jnp.abs(node_rep - ref_node)) / (jnp.max(jnp.abs(ref_node)) + 1e-6))
    assert err < 1e-1, f"kernel vs f32 reference mismatch: rel_err={err:.4f}"

    print("KERNEL_OK")
</pallas_src>

<mosaic_0001>
module attributes {stable_mosaic.version = 11 : i64} {
  func.func @gin_layer_kernel(%arg0: i32, %arg1: i32, %arg2: memref<1x1xf32, #tpu.memory_space<smem>>, %arg3: memref<16x128xf32, #tpu.memory_space<vmem>>, %arg4: memref<32x128xbf16, #tpu.memory_space<vmem>>, %arg5: memref<1x32xi32, #tpu.memory_space<vmem>>, %arg6: memref<128x256xbf16, #tpu.memory_space<vmem>>, %arg7: memref<1x256xf32, #tpu.memory_space<vmem>>, %arg8: memref<256x128xbf16, #tpu.memory_space<vmem>>, %arg9: memref<1x128xf32, #tpu.memory_space<vmem>>, %arg10: memref<16x128xf32, #tpu.memory_space<vmem>>, %arg11: memref<16x128xf32, #tpu.memory_space<vmem>>) attributes {dimension_semantics = [#tpu.dimension_semantics<parallel>, #tpu.dimension_semantics<arbitrary>], iteration_bounds = array<i64: 1, 1>, scalar_prefetch = 0 : i64, scratch_operands = 1 : i64, tpu.core_type = #tpu.core_type<tc>, window_params = [{transform_indices = @transform_0, window_bounds = array<i64: 1, 1>}, {transform_indices = @transform_1, window_bounds = array<i64: 16, 128>}, {transform_indices = @transform_2, window_bounds = array<i64: 32, 128>}, {transform_indices = @transform_3, window_bounds = array<i64: 1, 32>}, {pipeline_mode = #tpu.pipeline_mode<synchronous>, transform_indices = @transform_4, window_bounds = array<i64: 128, 256>}, {pipeline_mode = #tpu.pipeline_mode<synchronous>, transform_indices = @transform_5, window_bounds = array<i64: 1, 256>}, {pipeline_mode = #tpu.pipeline_mode<synchronous>, transform_indices = @transform_6, window_bounds = array<i64: 256, 128>}, {pipeline_mode = #tpu.pipeline_mode<synchronous>, transform_indices = @transform_7, window_bounds = array<i64: 1, 128>}, {transform_indices = @transform_8, window_bounds = array<i64: 16, 128>}]} {
    %c0_i32 = arith.constant 0 : i32
    %0 = arith.cmpi eq, %arg1, %c0_i32 : i32
    %1 = arith.extui %0 : i1 to i32
    %c0_i32_0 = arith.constant 0 : i32
    %2 = arith.cmpi ne, %1, %c0_i32_0 : i32
    scf.if %2 {
      %cst_10 = arith.constant 0.000000e+00 : f32
      %21 = vector.broadcast %cst_10 : f32 to vector<16x128xf32>
      %c0_11 = arith.constant 0 : index
      %c0_12 = arith.constant 0 : index
      %22 = vector.load %arg11[%c0_11, %c0_12] : memref<16x128xf32, #tpu.memory_space<vmem>>, vector<16x128xf32>
      tpu.vector_store %arg11[%c0_11, %c0_12], %21 {strides = array<i32>} : memref<16x128xf32, #tpu.memory_space<vmem>>, vector<16x128xf32>,
    } else {
    }
    %c0 = arith.constant 0 : index
    %c0_1 = arith.constant 0 : index
    %3 = vector.load %arg5[%c0, %c0_1] : memref<1x32xi32, #tpu.memory_space<vmem>>, vector<1x32xi32>
    %c16_i32 = arith.constant 16 : i32
    %4 = arith.muli %arg0, %c16_i32 : i32
    %5 = vector.broadcast %4 : i32 to vector<1x32xi32>
    %6 = arith.subi %3, %5 : vector<1x32xi32>
    %7 = tpu.iota {dimensions = array<i32: 0>} : vector<16x32xi32>
    %8 = vector.broadcast %6 : vector<1x32xi32> to vector<16x32xi32>
    %9 = arith.cmpi eq, %7, %8 : vector<16x32xi32>
    %10 = arith.extui %9 : vector<16x32xi1> to vector<16x32xi32>
    %11 = arith.sitofp %10 : vector<16x32xi32> to vector<16x32xf32>
    %12 = arith.truncf %11 : vector<16x32xf32> to vector<16x32xbf16>
    %c0_2 = arith.constant 0 : index
    %c0_3 = arith.constant 0 : index
    %13 = vector.load %arg11[%c0_2, %c0_3] : memref<16x128xf32, #tpu.memory_space<vmem>>, vector<16x128xf32>
    %c0_4 = arith.constant 0 : index
    %c0_5 = arith.constant 0 : index
    %14 = vector.load %arg4[%c0_4, %c0_5] : memref<32x128xbf16, #tpu.memory_space<vmem>>, vector<32x128xbf16>
    %cst = arith.constant dense<0.000000e+00> : vector<16x128xf32>
    %15 = tpu.matmul %12, %14, %cst {dimension_numbers = #tpu.dot_dimension_numbers<[1], [0], [0], [1], [0, 0, 1, 1], [], []>} : vector<16x32xbf16>, vector<32x128xbf16>, vector<16x128xf32> -> vector<16x128xf32>
    %16 = arith.addf %13, %15 : vector<16x128xf32>
    %c0_6 = arith.constant 0 : index
    %c0_7 = arith.constant 0 : index
    %17 = vector.load %arg11[%c0_6, %c0_7] : memref<16x128xf32, #tpu.memory_space<vmem>>, vector<16x128xf32>
    tpu.vector_store %arg11[%c0_6, %c0_7], %16 {strides = array<i32>} : memref<16x128xf32, #tpu.memory_space<vmem>>, vector<16x128xf32>,
    %c0_i32_8 = arith.constant 0 : i32
    %18 = arith.cmpi eq, %arg1, %c0_i32_8 : i32
    %19 = arith.extui %18 : i1 to i32
    %c0_i32_9 = arith.constant 0 : i32
    %20 = arith.cmpi ne, %19, %c0_i32_9 : i32
    scf.if %20 {
      %c0_10 = arith.constant 0 : index
      %c0_11 = arith.constant 0 : index
      %21 = memref.load %arg2[%c0_10, %c0_11] : memref<1x1xf32, #tpu.memory_space<smem>>
      %cst_12 = arith.constant 1.000000e+00 : f32
      %22 = arith.addf %cst_12, %21 : f32
      %c0_13 = arith.constant 0 : index
      %c0_14 = arith.constant 0 : index
      %23 = vector.load %arg3[%c0_13, %c0_14] : memref<16x128xf32, #tpu.memory_space<vmem>>, vector<16x128xf32>
      %24 = vector.broadcast %22 : f32 to vector<16x128xf32>
      %25 = arith.mulf %24, %23 : vector<16x128xf32>
      %c0_15 = arith.constant 0 : index
      %c0_16 = arith.constant 0 : index
      %26 = vector.load %arg11[%c0_15, %c0_16] : memref<16x128xf32, #tpu.memory_space<vmem>>, vector<16x128xf32>
      %27 = arith.addf %25, %26 : vector<16x128xf32>
      %28 = arith.truncf %27 : vector<16x128xf32> to vector<16x128xbf16>
      %c0_17 = arith.constant 0 : index
      %c0_18 = arith.constant 0 : index
      %29 = vector.load %arg6[%c0_17, %c0_18] : memref<128x256xbf16, #tpu.memory_space<vmem>>, vector<128x256xbf16>
      %cst_19 = arith.constant dense<0.000000e+00> : vector<16x256xf32>
      %30 = tpu.matmul %28, %29, %cst_19 {dimension_numbers = #tpu.dot_dimension_numbers<[1], [0], [0], [1], [0, 0, 1, 1], [], []>} : vector<16x128xbf16>, vector<128x256xbf16>, vector<16x256xf32> -> vector<16x256xf32>
      %c0_20 = arith.constant 0 : index
      %c0_21 = arith.constant 0 : index
      %31 = vector.load %arg7[%c0_20, %c0_21] : memref<1x256xf32, #tpu.memory_space<vmem>>, vector<1x256xf32>
      %32 = vector.broadcast %31 : vector<1x256xf32> to vector<16x256xf32>
      %33 = arith.addf %30, %32 : vector<16x256xf32>
      %cst_22 = arith.constant 0.000000e+00 : f32
      %34 = vector.broadcast %cst_22 : f32 to vector<16x256xf32>
      %35 = arith.maximumf %33, %34 : vector<16x256xf32>
      %36 = arith.truncf %35 : vector<16x256xf32> to vector<16x256xbf16>
      %c0_23 = arith.constant 0 : index
      %c0_24 = arith.constant 0 : index
      %37 = vector.load %arg8[%c0_23, %c0_24] : memref<256x128xbf16, #tpu.memory_space<vmem>>, vector<256x128xbf16>
      %cst_25 = arith.constant dense<0.000000e+00> : vector<16x128xf32>
      %38 = tpu.matmul %36, %37, %cst_25 {dimension_numbers = #tpu.dot_dimension_numbers<[1], [0], [0], [1], [0, 0, 1, 1], [], []>} : vector<16x256xbf16>, vector<256x128xbf16>, vector<16x128xf32> -> vector<16x128xf32>
      %c0_26 = arith.constant 0 : index
      %c0_27 = arith.constant 0 : index
      %39 = vector.load %arg9[%c0_26, %c0_27] : memref<1x128xf32, #tpu.memory_space<vmem>>, vector<1x128xf32>
      %40 = vector.broadcast %39 : vector<1x128xf32> to vector<16x128xf32>
      %41 = arith.addf %38, %40 : vector<16x128xf32>
      %cst_28 = arith.constant 0.000000e+00 : f32
      %42 = vector.broadcast %cst_28 : f32 to vector<16x128xf32>
      %43 = arith.maximumf %41, %42 : vector<16x128xf32>
      %c0_29 = arith.constant 0 : index
      %c0_30 = arith.constant 0 : index
      %44 = vector.load %arg10[%c0_29, %c0_30] : memref<16x128xf32, #tpu.memory_space<vmem>>, vector<16x128xf32>
      tpu.vector_store %arg10[%c0_29, %c0_30], %43 {strides = array<i32>} : memref<16x128xf32, #tpu.memory_space<vmem>>, vector<16x128xf32>,
    } else {
    }
    return
  }
  func.func @transform_0(%arg0: i32, %arg1: i32) -> (i32, i32) {
    %c0_i32 = arith.constant 0 : i32
    %c0_i32_0 = arith.constant 0 : i32
    %c0_i32_1 = arith.constant 0 : i32
    return %c0_i32, %c0_i32_0 : i32, i32
  }
  func.func @transform_1(%arg0: i32, %arg1: i32) -> (i32, i32) {
    %c0_i32 = arith.constant 0 : i32
    %c0_i32_0 = arith.constant 0 : i32
    return %arg0, %c0_i32 : i32, i32
  }
  func.func @transform_2(%arg0: i32, %arg1: i32) -> (i32, i32) {
    %c0_i32 = arith.constant 0 : i32
    %c0_i32_0 = arith.constant 0 : i32
    return %arg1, %c0_i32 : i32, i32
  }
  func.func @transform_3(%arg0: i32, %arg1: i32) -> (i32, i32) {
    %c0_i32 = arith.constant 0 : i32
    %c0_i32_0 = arith.constant 0 : i32
    return %c0_i32, %arg1 : i32, i32
  }
  func.func @transform_4(%arg0: i32, %arg1: i32) -> (i32, i32) {
    %c0_i32 = arith.constant 0 : i32
    %c0_i32_0 = arith.constant 0 : i32
    %c0_i32_1 = arith.constant 0 : i32
    return %c0_i32, %c0_i32_0 : i32, i32
  }
  func.func @transform_5(%arg0: i32, %arg1: i32) -> (i32, i32) {
    %c0_i32 = arith.constant 0 : i32
    %c0_i32_0 = arith.constant 0 : i32
    %c0_i32_1 = arith.constant 0 : i32
    return %c0_i32, %c0_i32_0 : i32, i32
  }
  func.func @transform_6(%arg0: i32, %arg1: i32) -> (i32, i32) {
    %c0_i32 = arith.constant 0 : i32
    %c0_i32_0 = arith.constant 0 : i32
    %c0_i32_1 = arith.constant 0 : i32
    return %c0_i32, %c0_i32_0 : i32, i32
  }
  func.func @transform_7(%arg0: i32, %arg1: i32) -> (i32, i32) {
    %c0_i32 = arith.constant 0 : i32
    %c0_i32_0 = arith.constant 0 : i32
    %c0_i32_1 = arith.constant 0 : i32
    return %c0_i32, %c0_i32_0 : i32, i32
  }
  func.func @transform_8(%arg0: i32, %arg1: i32) -> (i32, i32) {
    %c0_i32 = arith.constant 0 : i32
    %c0_i32_0 = arith.constant 0 : i32
    return %arg0, %c0_i32 : i32, i32
  }
}

module attributes {stable_mosaic.version = 11 : i64} {
  func.func @gin_layer_kernel(%arg0: i32, %arg1: i32, %arg2: memref<1x1xf32, #tpu.memory_space<smem>>, %arg3: memref<16x128xf32, #tpu.memory_space<vmem>>, %arg4: memref<32x128xbf16, #tpu.memory_space<vmem>>, %arg5: memref<1x32xi32, #tpu.memory_space<vmem>>, %arg6: memref<128x256xbf16, #tpu.memory_space<vmem>>, %arg7: memref<1x256xf32, #tpu.memory_space<vmem>>, %arg8: memref<256x128xbf16, #tpu.memory_space<vmem>>, %arg9: memref<1x128xf32, #tpu.memory_space<vmem>>, %arg10: memref<16x128xf32, #tpu.memory_space<vmem>>, %arg11: memref<16x128xf32, #tpu.memory_space<vmem>>) attributes {dimension_semantics = [#tpu.dimension_semantics<parallel>, #tpu.dimension_semantics<arbitrary>], iteration_bounds = array<i64: 1, 1>, scalar_prefetch = 0 : i64, scratch_operands = 1 : i64, tpu.core_type = #tpu.core_type<tc>, window_params = [{transform_indices = @transform_0, window_bounds = array<i64: 1, 1>}, {transform_indices = @transform_1, window_bounds = array<i64: 16, 128>}, {transform_indices = @transform_2, window_bounds = array<i64: 32, 128>}, {transform_indices = @transform_3, window_bounds = array<i64: 1, 32>}, {pipeline_mode = #tpu.pipeline_mode<synchronous>, transform_indices = @transform_4, window_bounds = array<i64: 128, 256>}, {pipeline_mode = #tpu.pipeline_mode<synchronous>, transform_indices = @transform_5, window_bounds = array<i64: 1, 256>}, {pipeline_mode = #tpu.pipeline_mode<synchronous>, transform_indices = @transform_6, window_bounds = array<i64: 256, 128>}, {pipeline_mode = #tpu.pipeline_mode<synchronous>, transform_indices = @transform_7, window_bounds = array<i64: 1, 128>}, {transform_indices = @transform_8, window_bounds = array<i64: 16, 128>}]} {
    %c0_i32 = arith.constant 0 : i32
    %0 = arith.cmpi eq, %arg1, %c0_i32 : i32
    %1 = arith.extui %0 : i1 to i32
    %c0_i32_0 = arith.constant 0 : i32
    %2 = arith.cmpi ne, %1, %c0_i32_0 : i32
    scf.if %2 {
      %cst_10 = arith.constant 0.000000e+00 : f32
      %21 = vector.broadcast %cst_10 : f32 to vector<16x128xf32>
      %c0_11 = arith.constant 0 : index
      %c0_12 = arith.constant 0 : index
      %22 = vector.load %arg11[%c0_11, %c0_12] : memref<16x128xf32, #tpu.memory_space<vmem>>, vector<16x128xf32>
      tpu.vector_store %arg11[%c0_11, %c0_12], %21 {strides = array<i32>} : memref<16x128xf32, #tpu.memory_space<vmem>>, vector<16x128xf32>,
    } else {
    }
    %c0 = arith.constant 0 : index
    %c0_1 = arith.constant 0 : index
    %3 = vector.load %arg5[%c0, %c0_1] : memref<1x32xi32, #tpu.memory_space<vmem>>, vector<1x32xi32>
    %c16_i32 = arith.constant 16 : i32
    %4 = arith.muli %arg0, %c16_i32 : i32
    %5 = vector.broadcast %4 : i32 to vector<1x32xi32>
    %6 = arith.subi %3, %5 : vector<1x32xi32>
    %7 = tpu.iota {dimensions = array<i32: 0>} : vector<16x32xi32>
    %8 = vector.broadcast %6 : vector<1x32xi32> to vector<16x32xi32>
    %9 = arith.cmpi eq, %7, %8 : vector<16x32xi32>
    %10 = arith.extui %9 : vector<16x32xi1> to vector<16x32xi32>
    %11 = arith.sitofp %10 : vector<16x32xi32> to vector<16x32xf32>
    %12 = arith.truncf %11 : vector<16x32xf32> to vector<16x32xbf16>
    %c0_2 = arith.constant 0 : index
    %c0_3 = arith.constant 0 : index
    %13 = vector.load %arg11[%c0_2, %c0_3] : memref<16x128xf32, #tpu.memory_space<vmem>>, vector<16x128xf32>
    %c0_4 = arith.constant 0 : index
    %c0_5 = arith.constant 0 : index
    %14 = vector.load %arg4[%c0_4, %c0_5] : memref<32x128xbf16, #tpu.memory_space<vmem>>, vector<32x128xbf16>
    %cst = arith.constant dense<0.000000e+00> : vector<16x128xf32>
    %15 = tpu.matmul %12, %14, %cst {dimension_numbers = #tpu.dot_dimension_numbers<[1], [0], [0], [1], [0, 0, 1, 1], [], []>} : vector<16x32xbf16>, vector<32x128xbf16>, vector<16x128xf32> -> vector<16x128xf32>
    %16 = arith.addf %13, %15 : vector<16x128xf32>
    %c0_6 = arith.constant 0 : index
    %c0_7 = arith.constant 0 : index
    %17 = vector.load %arg11[%c0_6, %c0_7] : memref<16x128xf32, #tpu.memory_space<vmem>>, vector<16x128xf32>
    tpu.vector_store %arg11[%c0_6, %c0_7], %16 {strides = array<i32>} : memref<16x128xf32, #tpu.memory_space<vmem>>, vector<16x128xf32>,
    %c0_i32_8 = arith.constant 0 : i32
    %18 = arith.cmpi eq, %arg1, %c0_i32_8 : i32
    %19 = arith.extui %18 : i1 to i32
    %c0_i32_9 = arith.constant 0 : i32
    %20 = arith.cmpi ne, %19, %c0_i32_9 : i32
    scf.if %20 {
      %c0_10 = arith.constant 0 : index
      %c0_11 = arith.constant 0 : index
      %21 = memref.load %arg2[%c0_10, %c0_11] : memref<1x1xf32, #tpu.memory_space<smem>>
      %cst_12 = arith.constant 1.000000e+00 : f32
      %22 = arith.addf %cst_12, %21 : f32
      %c0_13 = arith.constant 0 : index
      %c0_14 = arith.constant 0 : index
      %23 = vector.load %arg3[%c0_13, %c0_14] : memref<16x128xf32, #tpu.memory_space<vmem>>, vector<16x128xf32>
      %24 = vector.broadcast %22 : f32 to vector<16x128xf32>
      %25 = arith.mulf %24, %23 : vector<16x128xf32>
      %c0_15 = arith.constant 0 : index
      %c0_16 = arith.constant 0 : index
      %26 = vector.load %arg11[%c0_15, %c0_16] : memref<16x128xf32, #tpu.memory_space<vmem>>, vector<16x128xf32>
      %27 = arith.addf %25, %26 : vector<16x128xf32>
      %28 = arith.truncf %27 : vector<16x128xf32> to vector<16x128xbf16>
      %c0_17 = arith.constant 0 : index
      %c0_18 = arith.constant 0 : index
      %29 = vector.load %arg6[%c0_17, %c0_18] : memref<128x256xbf16, #tpu.memory_space<vmem>>, vector<128x256xbf16>
      %cst_19 = arith.constant dense<0.000000e+00> : vector<16x256xf32>
      %30 = tpu.matmul %28, %29, %cst_19 {dimension_numbers = #tpu.dot_dimension_numbers<[1], [0], [0], [1], [0, 0, 1, 1], [], []>} : vector<16x128xbf16>, vector<128x256xbf16>, vector<16x256xf32> -> vector<16x256xf32>
      %c0_20 = arith.constant 0 : index
      %c0_21 = arith.constant 0 : index
      %31 = vector.load %arg7[%c0_20, %c0_21] : memref<1x256xf32, #tpu.memory_space<vmem>>, vector<1x256xf32>
      %32 = vector.broadcast %31 : vector<1x256xf32> to vector<16x256xf32>
      %33 = arith.addf %30, %32 : vector<16x256xf32>
      %cst_22 = arith.constant 0.000000e+00 : f32
      %34 = vector.broadcast %cst_22 : f32 to vector<16x256xf32>
      %35 = arith.maximumf %33, %34 : vector<16x256xf32>
      %36 = arith.truncf %35 : vector<16x256xf32> to vector<16x256xbf16>
      %c0_23 = arith.constant 0 : index
      %c0_24 = arith.constant 0 : index
      %37 = vector.load %arg8[%c0_23, %c0_24] : memref<256x128xbf16, #tpu.memory_space<vmem>>, vector<256x128xbf16>
      %cst_25 = arith.constant dense<0.000000e+00> : vector<16x128xf32>
      %38 = tpu.matmul %36, %37, %cst_25 {dimension_numbers = #tpu.dot_dimension_numbers<[1], [0], [0], [1], [0, 0, 1, 1], [], []>} : vector<16x256xbf16>, vector<256x128xbf16>, vector<16x128xf32> -> vector<16x128xf32>
      %c0_26 = arith.constant 0 : index
      %c0_27 = arith.constant 0 : index
      %39 = vector.load %arg9[%c0_26, %c0_27] : memref<1x128xf32, #tpu.memory_space<vmem>>, vector<1x128xf32>
      %40 = vector.broadcast %39 : vector<1x128xf32> to vector<16x128xf32>
      %41 = arith.addf %38, %40 : vector<16x128xf32>
      %c0_28 = arith.constant 0 : index
      %c0_29 = arith.constant 0 : index
      %42 = vector.load %arg10[%c0_28, %c0_29] : memref<16x128xf32, #tpu.memory_space<vmem>>, vector<16x128xf32>
      tpu.vector_store %arg10[%c0_28, %c0_29], %41 {strides = array<i32>} : memref<16x128xf32, #tpu.memory_space<vmem>>, vector<16x128xf32>,
    } else {
    }
    return
  }
  func.func @transform_0(%arg0: i32, %arg1: i32) -> (i32, i32) {
    %c0_i32 = arith.constant 0 : i32
    %c0_i32_0 = arith.constant 0 : i32
    %c0_i32_1 = arith.constant 0 : i32
    return %c0_i32, %c0_i32_0 : i32, i32
  }
  func.func @transform_1(%arg0: i32, %arg1: i32) -> (i32, i32) {
    %c0_i32 = arith.constant 0 : i32
    %c0_i32_0 = arith.constant 0 : i32
    return %arg0, %c0_i32 : i32, i32
  }
  func.func @transform_2(%arg0: i32, %arg1: i32) -> (i32, i32) {
    %c0_i32 = arith.constant 0 : i32
    %c0_i32_0 = arith.constant 0 : i32
    return %arg1, %c0_i32 : i32, i32
  }
  func.func @transform_3(%arg0: i32, %arg1: i32) -> (i32, i32) {
    %c0_i32 = arith.constant 0 : i32
    %c0_i32_0 = arith.constant 0 : i32
    return %c0_i32, %arg1 : i32, i32
  }
  func.func @transform_4(%arg0: i32, %arg1: i32) -> (i32, i32) {
    %c0_i32 = arith.constant 0 : i32
    %c0_i32_0 = arith.constant 0 : i32
    %c0_i32_1 = arith.constant 0 : i32
    return %c0_i32, %c0_i32_0 : i32, i32
  }
  func.func @transform_5(%arg0: i32, %arg1: i32) -> (i32, i32) {
    %c0_i32 = arith.constant 0 : i32
    %c0_i32_0 = arith.constant 0 : i32
    %c0_i32_1 = arith.constant 0 : i32
    return %c0_i32, %c0_i32_0 : i32, i32
  }
  func.func @transform_6(%arg0: i32, %arg1: i32) -> (i32, i32) {
    %c0_i32 = arith.constant 0 : i32
    %c0_i32_0 = arith.constant 0 : i32
    %c0_i32_1 = arith.constant 0 : i32
    return %c0_i32, %c0_i32_0 : i32, i32
  }
  func.func @transform_7(%arg0: i32, %arg1: i32) -> (i32, i32) {
    %c0_i32 = arith.constant 0 : i32
    %c0_i32_0 = arith.constant 0 : i32
    %c0_i32_1 = arith.constant 0 : i32
    return %c0_i32, %c0_i32_0 : i32, i32
  }
  func.func @transform_8(%arg0: i32, %arg1: i32) -> (i32, i32) {
    %c0_i32 = arith.constant 0 : i32
    %c0_i32_0 = arith.constant 0 : i32
    return %arg0, %c0_i32 : i32, i32
  }
}

module attributes {stable_mosaic.version = 11 : i64} {
  func.func @vn_update_kernel(%arg0: i32, %arg1: memref<1x16xi32, #tpu.memory_space<vmem>>, %arg2: memref<16x128xf32, #tpu.memory_space<vmem>>, %arg3: memref<8x128xf32, #tpu.memory_space<vmem>>, %arg4: memref<128x256xbf16, #tpu.memory_space<vmem>>, %arg5: memref<1x256xf32, #tpu.memory_space<vmem>>, %arg6: memref<256x128xbf16, #tpu.memory_space<vmem>>, %arg7: memref<1x128xf32, #tpu.memory_space<vmem>>, %arg8: memref<8x128xf32, #tpu.memory_space<vmem>>, %arg9: memref<8x128xf32, #tpu.memory_space<vmem>>) attributes {dimension_semantics = [#tpu.dimension_semantics<arbitrary>], iteration_bounds = array<i64: 1>, scalar_prefetch = 0 : i64, scratch_operands = 1 : i64, tpu.core_type = #tpu.core_type<tc>, window_params = [{transform_indices = @transform_0, window_bounds = array<i64: 1, 16>}, {transform_indices = @transform_1, window_bounds = array<i64: 16, 128>}, {pipeline_mode = #tpu.pipeline_mode<synchronous>, transform_indices = @transform_2, window_bounds = array<i64: 8, 128>}, {pipeline_mode = #tpu.pipeline_mode<synchronous>, transform_indices = @transform_3, window_bounds = array<i64: 128, 256>}, {pipeline_mode = #tpu.pipeline_mode<synchronous>, transform_indices = @transform_4, window_bounds = array<i64: 1, 256>}, {pipeline_mode = #tpu.pipeline_mode<synchronous>, transform_indices = @transform_5, window_bounds = array<i64: 256, 128>}, {pipeline_mode = #tpu.pipeline_mode<synchronous>, transform_indices = @transform_6, window_bounds = array<i64: 1, 128>}, {pipeline_mode = #tpu.pipeline_mode<synchronous>, transform_indices = @transform_7, window_bounds = array<i64: 8, 128>}]} {
    %c0_i32 = arith.constant 0 : i32
    %0 = arith.cmpi eq, %arg0, %c0_i32 : i32
    %1 = arith.extui %0 : i1 to i32
    %c0_i32_0 = arith.constant 0 : i32
    %2 = arith.cmpi ne, %1, %c0_i32_0 : i32
    scf.if %2 {
      %cst_10 = arith.constant 0.000000e+00 : f32
      %19 = vector.broadcast %cst_10 : f32 to vector<8x128xf32>
      %c0_11 = arith.constant 0 : index
      %c0_12 = arith.constant 0 : index
      %20 = vector.load %arg9[%c0_11, %c0_12] : memref<8x128xf32, #tpu.memory_space<vmem>>, vector<8x128xf32>
      tpu.vector_store %arg9[%c0_11, %c0_12], %19 {strides = array<i32>} : memref<8x128xf32, #tpu.memory_space<vmem>>, vector<8x128xf32>,
    } else {
    }
    %3 = tpu.iota {dimensions = array<i32: 0>} : vector<8x16xi32>
    %c0 = arith.constant 0 : index
    %c0_1 = arith.constant 0 : index
    %4 = vector.load %arg1[%c0, %c0_1] : memref<1x16xi32, #tpu.memory_space<vmem>>, vector<1x16xi32>
    %5 = vector.broadcast %4 : vector<1x16xi32> to vector<8x16xi32>
    %6 = arith.cmpi eq, %3, %5 : vector<8x16xi32>
    %7 = arith.extui %6 : vector<8x16xi1> to vector<8x16xi32>
    %8 = arith.sitofp %7 : vector<8x16xi32> to vector<8x16xf32>
    %9 = arith.truncf %8 : vector<8x16xf32> to vector<8x16xbf16>
    %c0_2 = arith.constant 0 : index
    %c0_3 = arith.constant 0 : index
    %10 = vector.load %arg9[%c0_2, %c0_3] : memref<8x128xf32, #tpu.memory_space<vmem>>, vector<8x128xf32>
    %c0_4 = arith.constant 0 : index
    %c0_5 = arith.constant 0 : index
    %11 = vector.load %arg2[%c0_4, %c0_5] : memref<16x128xf32, #tpu.memory_space<vmem>>, vector<16x128xf32>
    %12 = arith.truncf %11 : vector<16x128xf32> to vector<16x128xbf16>
    %cst = arith.constant dense<0.000000e+00> : vector<8x128xf32>
    %13 = tpu.matmul %9, %12, %cst {dimension_numbers = #tpu.dot_dimension_numbers<[1], [0], [0], [1], [0, 0, 1, 1], [], []>} : vector<8x16xbf16>, vector<16x128xbf16>, vector<8x128xf32> -> vector<8x128xf32>
    %14 = arith.addf %10, %13 : vector<8x128xf32>
    %c0_6 = arith.constant 0 : index
    %c0_7 = arith.constant 0 : index
    %15 = vector.load %arg9[%c0_6, %c0_7] : memref<8x128xf32, #tpu.memory_space<vmem>>, vector<8x128xf32>
    tpu.vector_store %arg9[%c0_6, %c0_7], %14 {strides = array<i32>} : memref<8x128xf32, #tpu.memory_space<vmem>>, vector<8x128xf32>,
    %c0_i32_8 = arith.constant 0 : i32
    %16 = arith.cmpi eq, %arg0, %c0_i32_8 : i32
    %17 = arith.extui %16 : i1 to i32
    %c0_i32_9 = arith.constant 0 : i32
    %18 = arith.cmpi ne, %17, %c0_i32_9 : i32
    scf.if %18 {
      %c0_10 = arith.constant 0 : index
      %c0_11 = arith.constant 0 : index
      %19 = vector.load %arg9[%c0_10, %c0_11] : memref<8x128xf32, #tpu.memory_space<vmem>>, vector<8x128xf32>
      %c0_12 = arith.constant 0 : index
      %c0_13 = arith.constant 0 : index
      %20 = vector.load %arg3[%c0_12, %c0_13] : memref<8x128xf32, #tpu.memory_space<vmem>>, vector<8x128xf32>
      %21 = arith.addf %19, %20 : vector<8x128xf32>
      %22 = arith.truncf %21 : vector<8x128xf32> to vector<8x128xbf16>
      %c0_14 = arith.constant 0 : index
      %c0_15 = arith.constant 0 : index
      %23 = vector.load %arg4[%c0_14, %c0_15] : memref<128x256xbf16, #tpu.memory_space<vmem>>, vector<128x256xbf16>
      %cst_16 = arith.constant dense<0.000000e+00> : vector<8x256xf32>
      %24 = tpu.matmul %22, %23, %cst_16 {dimension_numbers = #tpu.dot_dimension_numbers<[1], [0], [0], [1], [0, 0, 1, 1], [], []>} : vector<8x128xbf16>, vector<128x256xbf16>, vector<8x256xf32> -> vector<8x256xf32>
      %c0_17 = arith.constant 0 : index
      %c0_18 = arith.constant 0 : index
      %25 = vector.load %arg5[%c0_17, %c0_18] : memref<1x256xf32, #tpu.memory_space<vmem>>, vector<1x256xf32>
      %26 = vector.broadcast %25 : vector<1x256xf32> to vector<8x256xf32>
      %27 = arith.addf %24, %26 : vector<8x256xf32>
      %cst_19 = arith.constant 0.000000e+00 : f32
      %28 = vector.broadcast %cst_19 : f32 to vector<8x256xf32>
      %29 = arith.maximumf %27, %28 : vector<8x256xf32>
      %30 = arith.truncf %29 : vector<8x256xf32> to vector<8x256xbf16>
      %c0_20 = arith.constant 0 : index
      %c0_21 = arith.constant 0 : index
      %31 = vector.load %arg6[%c0_20, %c0_21] : memref<256x128xbf16, #tpu.memory_space<vmem>>, vector<256x128xbf16>
      %cst_22 = arith.constant dense<0.000000e+00> : vector<8x128xf32>
      %32 = tpu.matmul %30, %31, %cst_22 {dimension_numbers = #tpu.dot_dimension_numbers<[1], [0], [0], [1], [0, 0, 1, 1], [], []>} : vector<8x256xbf16>, vector<256x128xbf16>, vector<8x128xf32> -> vector<8x128xf32>
      %c0_23 = arith.constant 0 : index
      %c0_24 = arith.constant 0 : index
      %33 = vector.load %arg7[%c0_23, %c0_24] : memref<1x128xf32, #tpu.memory_space<vmem>>, vector<1x128xf32>
      %34 = vector.broadcast %33 : vector<1x128xf32> to vector<8x128xf32>
      %35 = arith.addf %32, %34 : vector<8x128xf32>
      %cst_25 = arith.constant 0.000000e+00 : f32
      %36 = vector.broadcast %cst_25 : f32 to vector<8x128xf32>
      %37 = arith.maximumf %35, %36 : vector<8x128xf32>
      %c0_26 = arith.constant 0 : index
      %c0_27 = arith.constant 0 : index
      %38 = vector.load %arg8[%c0_26, %c0_27] : memref<8x128xf32, #tpu.memory_space<vmem>>, vector<8x128xf32>
      tpu.vector_store %arg8[%c0_26, %c0_27], %37 {strides = array<i32>} : memref<8x128xf32, #tpu.memory_space<vmem>>, vector<8x128xf32>,
    } else {
    }
    return
  }
  func.func @transform_0(%arg0: i32) -> (i32, i32) {
    %c0_i32 = arith.constant 0 : i32
    %c0_i32_0 = arith.constant 0 : i32
    return %c0_i32, %arg0 : i32, i32
  }
  func.func @transform_1(%arg0: i32) -> (i32, i32) {
    %c0_i32 = arith.constant 0 : i32
    %c0_i32_0 = arith.constant 0 : i32
    return %arg0, %c0_i32 : i32, i32
  }
  func.func @transform_2(%arg0: i32) -> (i32, i32) {
    %c0_i32 = arith.constant 0 : i32
    %c0_i32_0 = arith.constant 0 : i32
    %c0_i32_1 = arith.constant 0 : i32
    return %c0_i32, %c0_i32_0 : i32, i32
  }
  func.func @transform_3(%arg0: i32) -> (i32, i32) {
    %c0_i32 = arith.constant 0 : i32
    %c0_i32_0 = arith.constant 0 : i32
    %c0_i32_1 = arith.constant 0 : i32
    return %c0_i32, %c0_i32_0 : i32, i32
  }
  func.func @transform_4(%arg0: i32) -> (i32, i32) {
    %c0_i32 = arith.constant 0 : i32
    %c0_i32_0 = arith.constant 0 : i32
    %c0_i32_1 = arith.constant 0 : i32
    return %c0_i32, %c0_i32_0 : i32, i32
  }
  func.func @transform_5(%arg0: i32) -> (i32, i32) {
    %c0_i32 = arith.constant 0 : i32
    %c0_i32_0 = arith.constant 0 : i32
    %c0_i32_1 = arith.constant 0 : i32
    return %c0_i32, %c0_i32_0 : i32, i32
  }
  func.func @transform_6(%arg0: i32) -> (i32, i32) {
    %c0_i32 = arith.constant 0 : i32
    %c0_i32_0 = arith.constant 0 : i32
    %c0_i32_1 = arith.constant 0 : i32
    return %c0_i32, %c0_i32_0 : i32, i32
  }
  func.func @transform_7(%arg0: i32) -> (i32, i32) {
    %c0_i32 = arith.constant 0 : i32
    %c0_i32_0 = arith.constant 0 : i32
    %c0_i32_1 = arith.constant 0 : i32
    return %c0_i32, %c0_i32_0 : i32, i32
  }
}

</mosaic_0001>

<bundles_post_ra>
// kernel: gnn_node_virtualnode_forward.5
= control target key start
LH: loop header
LB: loop body
LE: loop exit
PB: predicated region body
PF: predicated region fallthrough
CT: control target
= control target key end

     0   :  { %v41_v0 = vlaneseq  ;;  %v593_v1 = vmov 0.0   ;;  %vm594_vm0 = vmmov 0   ;;  %vm73_vm3 = vcmask 261120   ;;  %s773_s2 = inlined_call_operand.vmem [shape: bf16[32,128], index: 2, kind: input, shape index: {}]   ;;  %s774_s3 = inlined_call_operand.vmem [shape: s32[1,32], index: 3, kind: input, shape index: {}]   ;;  %s775_s4 = inlined_call_operand.vmem [shape: bf16[128,256], index: 4, kind: input, shape index: {}]   ;;  %s776_s6 = inlined_call_operand.vmem [shape: bf16[256,128], index: 6, kind: input, shape index: {}]   ;;  %s777_s0 = inlined_call_operand.<no memory space> [shape: f32[1,1], index: 0, kind: input, shape index: {}]   ;;  %s778_s1 = inlined_call_operand.vmem [shape: f32[16,128], index: 1, kind: input, shape index: {}]   ;;  %s779_s5 = inlined_call_operand.vmem [shape: f32[1,256], index: 5, kind: input, shape index: {}]   ;;  %s780_s7 = inlined_call_operand.vmem [shape: f32[1,128], index: 7, kind: input, shape index: {}]   ;;  %s781_s8 = inlined_call_operand.vmem [shape: f32[16,128], index: 8, kind: output, shape index: {}]  }
   0x1   :  { %540 = vmatprep.subr.bf16.mxu0 %v593_v1  ;;  %v551_v2 = vld [vmem:[%s773_s2 + $0x8] sm:$0xff]   ;;  %544 = vmatprep.mubr.msk.bf16.mxu0 %vm594_vm0, %v593_v1  ;;  %v552_v3 = vld [vmem:[%s773_s2] sm:$0xff]   ;;  %v553_v7 = vld [vmem:[%s775_s4 + $0x74] ss:$8 sps:$4 sm:$0xff]   ;;  %v595_v26 = vmov 0   ;;  %s126_s15 = sadd.f32 1.0, %s777_s0 }
   0x2   :  { %v647_v4 = vshrl.u32 %v41_v0, 7  ;;  %541 = vmatpush3.bf16.msra.mxu0 %v551_v2  ;;  %v476_v5 = vld [vmem:[%s774_s3] ss:$0 sm:$0xff]  ;;  %v555_v8 = vld [vmem:[%s775_s4 + $0x70] ss:$8 sps:$4 sm:$0xff]   ;;  %245 = vmatprep.subr.bf16.mxu1 %v553_v7  ;;  %v581_v31 = vld [vmem:[%s776_s6 + $0x68] sm:$0xff]  }
   0x3   :  { %542 = vmatprep.subr.bf16.mxu0 %v593_v1  ;;  %v556_v10 = vld [vmem:[%s775_s4 + $0x64] ss:$8 sps:$4 sm:$0xff]   ;;  %246 = vmatpush1.bf16.msra.mxu1 %v555_v8  ;;  %v558_v12 = vld [vmem:[%s775_s4 + $0x60] ss:$8 sps:$4 sm:$0xff]   ;;  %v559_v14 = vld [vmem:[%s775_s4 + $0x54] ss:$8 sps:$4 sm:$0xff]   ;;  %v129_v38 = vstv %s126_s15 }
   0x4   :  { %v43_v6 = vadd.s32 8, %v647_v4  ;;  %vm48_vm1 = vcmp.eq.s32.totalorder %v647_v4, %v476_v5  ;;  %247 = vmatprep.subr.bf16.mxu1 %v556_v10  ;;  %v561_v15 = vld [vmem:[%s775_s4 + $0x50] ss:$8 sps:$4 sm:$0xff]   ;;  %v562_v16 = vld [vmem:[%s775_s4 + $0x44] ss:$8 sps:$4 sm:$0xff]   ;;  %277 = vmatprep.mubr.bf16.mxu1 %v595_v26  ;;  %v161_v55 = vsub.s32 1, %v647_v4 }
   0x5   :  { %v477_v9 = vsel %vm48_vm1, 1.0, %v593_v1  ;;  %v564_v17 = vld [vmem:[%s775_s4 + $0x40] ss:$8 sps:$4 sm:$0xff]   ;;  %v565_v18 = vld [vmem:[%s775_s4 + $0x34] ss:$8 sps:$4 sm:$0xff]   ;;  %v157_v56 = vsub.s32 0, %v647_v4 }
   0x6   :  { %vm49_vm2 = vcmp.eq.s32.totalorder %v43_v6, %v476_v5  ;;  %543 = vmatpush3.bf16.msra.mxu0 %v552_v3  ;;  %v567_v19 = vld [vmem:[%s775_s4 + $0x30] ss:$8 sps:$4 sm:$0xff]   ;;  %v568_v20 = vld [vmem:[%s775_s4 + $0x24] ss:$8 sps:$4 sm:$0xff]   ;;  %v570_v21 = vld [vmem:[%s775_s4 + $0x20] ss:$8 sps:$4 sm:$0xff]  }
   0x7   :  { %v478_v11 = vsel %vm49_vm2, 1.0, %v593_v1  ;;  %248 = vmatpush1.bf16.msra.mxu1 %v558_v12  ;;  %v571_v22 = vld [vmem:[%s775_s4 + $0x14] ss:$8 sps:$4 sm:$0xff]   ;;  %v573_v23 = vld [vmem:[%s775_s4 + $0x10] ss:$8 sps:$4 sm:$0xff]   ;;  %v582_v32 = vld [vmem:[%s776_s6 + $0x28] sm:$0xff]  }
   0x8   :  { %v54_v13 = vpack.c.bf16 %v478_v11, %v477_v9  ;;  %249 = vmatprep.subr.bf16.mxu1 %v559_v14  ;;  %v574_v24 = vld [vmem:[%s775_s4 + $0x4] ss:$8 sps:$4 sm:$0xff]   ;;  %v576_v25 = vld [vmem:[%s775_s4] ss:$8 sps:$4 sm:$0xff]   ;;  %v577_v27 = vld [vmem:[%s776_s6 + $0x78] sm:$0xff]  }
   0x9   :  { %v578_v28 = vld [vmem:[%s776_s6 + $0x38] sm:$0xff]   ;;  %518 = vmatprep.subr.bf16.mxu0 %v577_v27  ;;  %v579_v29 = vld [vmem:[%s776_s6 + $0x70] sm:$0xff]   ;;  %v583_v33 = vld [vmem:[%s776_s6 + $0x60] sm:$0xff]  }
   0xa   :  { %545 = vmatmul.mubr.msk.bf16.vlgmr.msra.gmra.mxu0 %vm73_vm3, %v54_v13  ;;  %v580_v30 = vld [vmem:[%s776_s6 + $0x30] sm:$0xff]   ;;  %v584_v34 = vld [vmem:[%s776_s6 + $0x20] sm:$0xff]   ;;  %v585_v35 = vld [vmem:[%s776_s6 + $0x58] sm:$0xff]  }
   0xb   :  { %250 = vmatpush1.bf16.msra.mxu1 %v561_v15  ;;  %519 = vmatpush3.bf16.msra.mxu0 %v578_v28  ;;  %v586_v36 = vld [vmem:[%s776_s6 + $0x18] sm:$0xff]   ;;  %v127_v37 = vld [vmem:[%s778_s1] sm:$0xff]  ;;  %v128_v39 = vld [vmem:[%s778_s1 + $0x8] sm:$0xff] }
   0xc   :  { %251 = vmatprep.subr.bf16.mxu1 %v562_v16  ;;  %520 = vmatprep.subr.bf16.mxu0 %v579_v29  ;;  %v130_v41 = vmul.f32 %v129_v38, %v127_v37  ;;  %v131_v42 = vmul.f32 %v129_v38, %v128_v39  ;;  %v587_v49 = vld [vmem:[%s776_s6 + $0x50] sm:$0xff]   ;;  %v589_v51 = vld [vmem:[%s776_s6 + $0x48] sm:$0xff]   ;;  %v591_v53 = vld [vmem:[%s776_s6 + $0x40] sm:$0xff]  }
   0xd   :  { %v588_v50 = vld [vmem:[%s776_s6 + $0x10] sm:$0xff]   ;;  %v590_v52 = vld [vmem:[%s776_s6 + $0x8] sm:$0xff]   ;;  %v592_v54 = vld [vmem:[%s776_s6] sm:$0xff]  }
   0xe   :  { %v153_v57 = vld [vmem:[%s779_s5] sm:$0x3] }
   0xf   :  { %252 = vmatpush1.bf16.msra.mxu1 %v564_v17  ;;  %521 = vmatpush3.bf16.msra.mxu0 %v580_v30  ;;  %v162_v59 = vrot.slane %v153_v57, %v161_v55  ;;  %v158_v60 = vrot.slane %v153_v57, %v157_v56  ;;  %v498_v11 = vld [vmem:[%s780_s7] ss:$0 sm:$0xff] }
  0x10   :  { %253 = vmatprep.subr.bf16.mxu1 %v565_v18  ;;  %522 = vmatprep.subr.bf16.mxu0 %v581_v31 }
  0x13   :  { %254 = vmatpush1.bf16.msra.mxu1 %v567_v19  ;;  %523 = vmatpush3.bf16.msra.mxu0 %v582_v32 }
  0x14   :  { %255 = vmatprep.subr.bf16.mxu1 %v568_v20  ;;  %524 = vmatprep.subr.bf16.mxu0 %v583_v33 }
  0x17   :  { %256 = vmatpush1.bf16.msra.mxu1 %v570_v21  ;;  %525 = vmatpush3.bf16.msra.mxu0 %v584_v34 }
  0x18   :  { %257 = vmatprep.subr.bf16.mxu1 %v571_v22  ;;  %526 = vmatprep.subr.bf16.mxu0 %v585_v35 }
  0x1b   :  { %258 = vmatpush1.bf16.msra.mxu1 %v573_v23  ;;  %527 = vmatpush3.bf16.msra.mxu0 %v586_v36 }
  0x1c   :  { %259 = vmatprep.subr.bf16.mxu1 %v574_v24  ;;  %528 = vmatprep.subr.bf16.mxu0 %v587_v49 }
  0x1f   :  { %260 = vmatpush1.bf16.msra.mxu1 %v576_v25  ;;  %529 = vmatpush3.bf16.msra.mxu0 %v588_v50 }
  0x20   :  { %530 = vmatprep.subr.bf16.mxu0 %v589_v51 }
  0x23   :  { %531 = vmatpush3.bf16.msra.mxu0 %v590_v52 }
  0x24   :  { %532 = vmatprep.subr.bf16.mxu0 %v591_v53 }
  0x27   :  { %533 = vmatpush3.bf16.msra.mxu0 %v592_v54 }
  0xca   :  { %v111_v40 = vpop.f32.mrf.mxu0 }
  0xcb   :  { %v134_v45 = vadd.f32 %v130_v41, %v111_v40 }
  0xcc   :  { %v546_v43 = vpop.f32.mrf.mxu0 }
  0xce   :  { %v114_v44 = vpop.f32.mrf.mxu0 }
  0xcf   :  { %v135_v46 = vadd.f32 %v131_v42, %v114_v44 }
  0xd0   :  { %v547_v47 = vpop.f32.mrf.mxu0 }
  0xd1   :  { %v136_v48 = vpack.c.bf16 %v135_v46, %v134_v45 }
  0xd3   :  { %278 = vmatmul.mubr.bf16.vlgmr.msra.gmra.mxu1 %v136_v48 }
 0x193   :  { %v279_v58 = vpop.f32.mrf.mxu1 }
 0x194   :  { %v280_v1 = vadd.f32 %v279_v58, %v158_v60 }
 0x195   :  { %v281_v61 = vpop.f32.mrf.mxu1 }
 0x196   :  { %v282_v63 = vadd.f32 %v281_v61, %v162_v59  ;;  %v288_v8 = vmax.f32 %v280_v1, 0.0 }
 0x197   :  { %v283_v62 = vpop.f32.mrf.mxu1 }
 0x198   :  { %v284_v0 = vadd.f32 %v283_v62, %v158_v60  ;;  %v289_v6 = vmax.f32 %v282_v63, 0.0 }
 0x199   :  { %v285_v2 = vpop.f32.mrf.mxu1 }
 0x19a   :  { %v286_v3 = vadd.f32 %v285_v2, %v162_v59  ;;  %v290_v5 = vmax.f32 %v284_v0, 0.0 }
 0x19c   :  { %v291_v7 = vmax.f32 %v286_v3, 0.0  ;;  %v292_v4 = vpack.c.bf16 %v290_v5, %v288_v8 }
 0x19e   :  { %v293_v9 = vpack.c.bf16 %v291_v7, %v289_v6 }
 0x1a0   :  { %461 = vmatprep.mubr.bf16.mxu0 %v293_v9 }
 0x1a1   :  { %462 = vmatmul.mubr.bf16.vlgmr.msra.gmra.mxu0 %v292_v4 }
 0x261   :  { %v534_v10 = vpop.f32.mrf.mxu0 }
 0x263   :  { %v535_v12 = vpop.f32.mrf.mxu0 }
 0x264   :  { %v536_v13 = vadd.f32 %v535_v12, %v534_v10 }
 0x265   :  { %v537_v14 = vpop.f32.mrf.mxu0 }
 0x266   :  { %v464_v15 = vadd.f32 %v536_v13, %v498_v11 }
 0x267   :  { %v538_v16 = vpop.f32.mrf.mxu0 }
 0x268   :  { %470 = vst [vmem:[%s781_s8] sm:$0xff] %v464_v15  ;;  %v539_v17 = vadd.f32 %v538_v16, %v537_v14 }
 0x26a   :  { %v467_v18 = vadd.f32 %v539_v17, %v498_v11 }
 0x26c   :  { %471 = vst [vmem:[%s781_s8 + $0x8] sm:$0xff] %v467_v18 }

// kernel: gnn_node_virtualnode_forward.3
= control target key start
LH: loop header
LB: loop body
LE: loop exit
PB: predicated region body
PF: predicated region fallthrough
CT: control target
= control target key end

     0   :  { %v41_v0 = vlaneseq  ;;  %v595_v1 = vmov 0.0   ;;  %vm596_vm0 = vmmov 0   ;;  %vm73_vm3 = vcmask 261120   ;;  %s775_s2 = inlined_call_operand.vmem [shape: bf16[32,128], index: 2, kind: input, shape index: {}]   ;;  %s776_s3 = inlined_call_operand.vmem [shape: s32[1,32], index: 3, kind: input, shape index: {}]   ;;  %s777_s4 = inlined_call_operand.vmem [shape: bf16[128,256], index: 4, kind: input, shape index: {}]   ;;  %s778_s6 = inlined_call_operand.vmem [shape: bf16[256,128], index: 6, kind: input, shape index: {}]   ;;  %s779_s0 = inlined_call_operand.<no memory space> [shape: f32[1,1], index: 0, kind: input, shape index: {}]   ;;  %s780_s1 = inlined_call_operand.vmem [shape: f32[16,128], index: 1, kind: input, shape index: {}]   ;;  %s781_s5 = inlined_call_operand.vmem [shape: f32[1,256], index: 5, kind: input, shape index: {}]   ;;  %s782_s7 = inlined_call_operand.vmem [shape: f32[1,128], index: 7, kind: input, shape index: {}]   ;;  %s783_s8 = inlined_call_operand.vmem [shape: f32[16,128], index: 8, kind: output, shape index: {}]  }
   0x1   :  { %542 = vmatprep.subr.bf16.mxu0 %v595_v1  ;;  %v553_v2 = vld [vmem:[%s775_s2 + $0x8] sm:$0xff]   ;;  %546 = vmatprep.mubr.msk.bf16.mxu0 %vm596_vm0, %v595_v1  ;;  %v554_v3 = vld [vmem:[%s775_s2] sm:$0xff]   ;;  %v555_v7 = vld [vmem:[%s777_s4 + $0x74] ss:$8 sps:$4 sm:$0xff]   ;;  %v597_v26 = vmov 0   ;;  %s126_s15 = sadd.f32 1.0, %s779_s0 }
   0x2   :  { %v649_v4 = vshrl.u32 %v41_v0, 7  ;;  %543 = vmatpush3.bf16.msra.mxu0 %v553_v2  ;;  %v478_v5 = vld [vmem:[%s776_s3] ss:$0 sm:$0xff]  ;;  %v557_v8 = vld [vmem:[%s777_s4 + $0x70] ss:$8 sps:$4 sm:$0xff]   ;;  %245 = vmatprep.subr.bf16.mxu1 %v555_v7  ;;  %v583_v31 = vld [vmem:[%s778_s6 + $0x68] sm:$0xff]  }
   0x3   :  { %544 = vmatprep.subr.bf16.mxu0 %v595_v1  ;;  %v558_v10 = vld [vmem:[%s777_s4 + $0x64] ss:$8 sps:$4 sm:$0xff]   ;;  %246 = vmatpush1.bf16.msra.mxu1 %v557_v8  ;;  %v560_v12 = vld [vmem:[%s777_s4 + $0x60] ss:$8 sps:$4 sm:$0xff]   ;;  %v561_v14 = vld [vmem:[%s777_s4 + $0x54] ss:$8 sps:$4 sm:$0xff]   ;;  %v129_v38 = vstv %s126_s15 }
   0x4   :  { %v43_v6 = vadd.s32 8, %v649_v4  ;;  %vm48_vm1 = vcmp.eq.s32.totalorder %v649_v4, %v478_v5  ;;  %247 = vmatprep.subr.bf16.mxu1 %v558_v10  ;;  %v563_v15 = vld [vmem:[%s777_s4 + $0x50] ss:$8 sps:$4 sm:$0xff]   ;;  %v564_v16 = vld [vmem:[%s777_s4 + $0x44] ss:$8 sps:$4 sm:$0xff]   ;;  %277 = vmatprep.mubr.bf16.mxu1 %v597_v26  ;;  %v161_v55 = vsub.s32 1, %v649_v4 }
   0x5   :  { %v479_v9 = vsel %vm48_vm1, 1.0, %v595_v1  ;;  %v566_v17 = vld [vmem:[%s777_s4 + $0x40] ss:$8 sps:$4 sm:$0xff]   ;;  %v567_v18 = vld [vmem:[%s777_s4 + $0x34] ss:$8 sps:$4 sm:$0xff]   ;;  %v157_v56 = vsub.s32 0, %v649_v4 }
   0x6   :  { %vm49_vm2 = vcmp.eq.s32.totalorder %v43_v6, %v478_v5  ;;  %545 = vmatpush3.bf16.msra.mxu0 %v554_v3  ;;  %v569_v19 = vld [vmem:[%s777_s4 + $0x30] ss:$8 sps:$4 sm:$0xff]   ;;  %v570_v20 = vld [vmem:[%s777_s4 + $0x24] ss:$8 sps:$4 sm:$0xff]   ;;  %v572_v21 = vld [vmem:[%s777_s4 + $0x20] ss:$8 sps:$4 sm:$0xff]  }
   0x7   :  { %v480_v11 = vsel %vm49_vm2, 1.0, %v595_v1  ;;  %248 = vmatpush1.bf16.msra.mxu1 %v560_v12  ;;  %v573_v22 = vld [vmem:[%s777_s4 + $0x14] ss:$8 sps:$4 sm:$0xff]   ;;  %v575_v23 = vld [vmem:[%s777_s4 + $0x10] ss:$8 sps:$4 sm:$0xff]   ;;  %v584_v32 = vld [vmem:[%s778_s6 + $0x28] sm:$0xff]  }
   0x8   :  { %v54_v13 = vpack.c.bf16 %v480_v11, %v479_v9  ;;  %249 = vmatprep.subr.bf16.mxu1 %v561_v14  ;;  %v576_v24 = vld [vmem:[%s777_s4 + $0x4] ss:$8 sps:$4 sm:$0xff]   ;;  %v578_v25 = vld [vmem:[%s777_s4] ss:$8 sps:$4 sm:$0xff]   ;;  %v579_v27 = vld [vmem:[%s778_s6 + $0x78] sm:$0xff]  }
   0x9   :  { %v580_v28 = vld [vmem:[%s778_s6 + $0x38] sm:$0xff]   ;;  %520 = vmatprep.subr.bf16.mxu0 %v579_v27  ;;  %v581_v29 = vld [vmem:[%s778_s6 + $0x70] sm:$0xff]   ;;  %v585_v33 = vld [vmem:[%s778_s6 + $0x60] sm:$0xff]  }
   0xa   :  { %547 = vmatmul.mubr.msk.bf16.vlgmr.msra.gmra.mxu0 %vm73_vm3, %v54_v13  ;;  %v582_v30 = vld [vmem:[%s778_s6 + $0x30] sm:$0xff]   ;;  %v586_v34 = vld [vmem:[%s778_s6 + $0x20] sm:$0xff]   ;;  %v587_v35 = vld [vmem:[%s778_s6 + $0x58] sm:$0xff]  }
   0xb   :  { %250 = vmatpush1.bf16.msra.mxu1 %v563_v15  ;;  %521 = vmatpush3.bf16.msra.mxu0 %v580_v28  ;;  %v588_v36 = vld [vmem:[%s778_s6 + $0x18] sm:$0xff]   ;;  %v127_v37 = vld [vmem:[%s780_s1] sm:$0xff]  ;;  %v128_v39 = vld [vmem:[%s780_s1 + $0x8] sm:$0xff] }
   0xc   :  { %251 = vmatprep.subr.bf16.mxu1 %v564_v16  ;;  %522 = vmatprep.subr.bf16.mxu0 %v581_v29  ;;  %v130_v41 = vmul.f32 %v129_v38, %v127_v37  ;;  %v131_v42 = vmul.f32 %v129_v38, %v128_v39  ;;  %v589_v49 = vld [vmem:[%s778_s6 + $0x50] sm:$0xff]   ;;  %v591_v51 = vld [vmem:[%s778_s6 + $0x48] sm:$0xff]   ;;  %v593_v53 = vld [vmem:[%s778_s6 + $0x40] sm:$0xff]  }
   0xd   :  { %v590_v50 = vld [vmem:[%s778_s6 + $0x10] sm:$0xff]   ;;  %v592_v52 = vld [vmem:[%s778_s6 + $0x8] sm:$0xff]   ;;  %v594_v54 = vld [vmem:[%s778_s6] sm:$0xff]  }
   0xe   :  { %v153_v57 = vld [vmem:[%s781_s5] sm:$0x3] }
   0xf   :  { %252 = vmatpush1.bf16.msra.mxu1 %v566_v17  ;;  %523 = vmatpush3.bf16.msra.mxu0 %v582_v30  ;;  %v162_v59 = vrot.slane %v153_v57, %v161_v55  ;;  %v158_v60 = vrot.slane %v153_v57, %v157_v56  ;;  %v500_v11 = vld [vmem:[%s782_s7] ss:$0 sm:$0xff] }
  0x10   :  { %253 = vmatprep.subr.bf16.mxu1 %v567_v18  ;;  %524 = vmatprep.subr.bf16.mxu0 %v583_v31 }
  0x13   :  { %254 = vmatpush1.bf16.msra.mxu1 %v569_v19  ;;  %525 = vmatpush3.bf16.msra.mxu0 %v584_v32 }
  0x14   :  { %255 = vmatprep.subr.bf16.mxu1 %v570_v20  ;;  %526 = vmatprep.subr.bf16.mxu0 %v585_v33 }
  0x17   :  { %256 = vmatpush1.bf16.msra.mxu1 %v572_v21  ;;  %527 = vmatpush3.bf16.msra.mxu0 %v586_v34 }
  0x18   :  { %257 = vmatprep.subr.bf16.mxu1 %v573_v22  ;;  %528 = vmatprep.subr.bf16.mxu0 %v587_v35 }
  0x1b   :  { %258 = vmatpush1.bf16.msra.mxu1 %v575_v23  ;;  %529 = vmatpush3.bf16.msra.mxu0 %v588_v36 }
  0x1c   :  { %259 = vmatprep.subr.bf16.mxu1 %v576_v24  ;;  %530 = vmatprep.subr.bf16.mxu0 %v589_v49 }
  0x1f   :  { %260 = vmatpush1.bf16.msra.mxu1 %v578_v25  ;;  %531 = vmatpush3.bf16.msra.mxu0 %v590_v50 }
  0x20   :  { %532 = vmatprep.subr.bf16.mxu0 %v591_v51 }
  0x23   :  { %533 = vmatpush3.bf16.msra.mxu0 %v592_v52 }
  0x24   :  { %534 = vmatprep.subr.bf16.mxu0 %v593_v53 }
  0x27   :  { %535 = vmatpush3.bf16.msra.mxu0 %v594_v54 }
  0xca   :  { %v111_v40 = vpop.f32.mrf.mxu0 }
  0xcb   :  { %v134_v45 = vadd.f32 %v130_v41, %v111_v40 }
  0xcc   :  { %v548_v43 = vpop.f32.mrf.mxu0 }
  0xce   :  { %v114_v44 = vpop.f32.mrf.mxu0 }
  0xcf   :  { %v135_v46 = vadd.f32 %v131_v42, %v114_v44 }
  0xd0   :  { %v549_v47 = vpop.f32.mrf.mxu0 }
  0xd1   :  { %v136_v48 = vpack.c.bf16 %v135_v46, %v134_v45 }
  0xd3   :  { %278 = vmatmul.mubr.bf16.vlgmr.msra.gmra.mxu1 %v136_v48 }
 0x193   :  { %v279_v58 = vpop.f32.mrf.mxu1 }
 0x194   :  { %v280_v1 = vadd.f32 %v279_v58, %v158_v60 }
 0x195   :  { %v281_v61 = vpop.f32.mrf.mxu1 }
 0x196   :  { %v282_v63 = vadd.f32 %v281_v61, %v162_v59  ;;  %v288_v8 = vmax.f32 %v280_v1, 0.0 }
 0x197   :  { %v283_v62 = vpop.f32.mrf.mxu1 }
 0x198   :  { %v284_v0 = vadd.f32 %v283_v62, %v158_v60  ;;  %v289_v6 = vmax.f32 %v282_v63, 0.0 }
 0x199   :  { %v285_v2 = vpop.f32.mrf.mxu1 }
 0x19a   :  { %v286_v3 = vadd.f32 %v285_v2, %v162_v59  ;;  %v290_v5 = vmax.f32 %v284_v0, 0.0 }
 0x19c   :  { %v291_v7 = vmax.f32 %v286_v3, 0.0  ;;  %v292_v4 = vpack.c.bf16 %v290_v5, %v288_v8 }
 0x19e   :  { %v293_v9 = vpack.c.bf16 %v291_v7, %v289_v6 }
 0x1a0   :  { %461 = vmatprep.mubr.bf16.mxu0 %v293_v9 }
 0x1a1   :  { %462 = vmatmul.mubr.bf16.vlgmr.msra.gmra.mxu0 %v292_v4 }
 0x261   :  { %v536_v10 = vpop.f32.mrf.mxu0 }
 0x263   :  { %v537_v12 = vpop.f32.mrf.mxu0 }
 0x264   :  { %v538_v13 = vadd.f32 %v537_v12, %v536_v10 }
 0x265   :  { %v539_v14 = vpop.f32.mrf.mxu0 }
 0x266   :  { %v464_v15 = vadd.f32 %v538_v13, %v500_v11 }
 0x267   :  { %v540_v16 = vpop.f32.mrf.mxu0 }
 0x268   :  { %v470_v17 = vmax.f32 %v464_v15, 0.0  ;;  %v541_v18 = vadd.f32 %v540_v16, %v539_v14 }
 0x26a   :  { %472 = vst [vmem:[%s783_s8] sm:$0xff] %v470_v17  ;;  %v467_v19 = vadd.f32 %v541_v18, %v500_v11 }
 0x26c   :  { %v471_v20 = vmax.f32 %v467_v19, 0.0 }
 0x26e   :  { %473 = vst [vmem:[%s783_s8 + $0x8] sm:$0xff] %v471_v20 }

// kernel: gnn_node_virtualnode_forward.4
= control target key start
LH: loop header
LB: loop body
LE: loop exit
PB: predicated region body
PF: predicated region fallthrough
CT: control target
= control target key end

     0   :  { %v32_v0 = vlaneseq  ;;  %v543_v2 = vmov 0.0   ;;  %vm544_vm0 = vmmov 0   ;;  %vm47_vm2 = vcmask 130048   ;;  %s708_s0 = inlined_call_operand.vmem [shape: s32[1,16], index: 0, kind: input, shape index: {}]   ;;  %s709_s1 = inlined_call_operand.vmem [shape: f32[16,128], index: 1, kind: input, shape index: {}]   ;;  %s710_s3 = inlined_call_operand.vmem [shape: bf16[128,256], index: 3, kind: input, shape index: {}]   ;;  %s711_s5 = inlined_call_operand.vmem [shape: bf16[256,128], index: 5, kind: input, shape index: {}]   ;;  %s712_s2 = inlined_call_operand.vmem [shape: f32[8,128], index: 2, kind: input, shape index: {}]   ;;  %s713_s4 = inlined_call_operand.vmem [shape: f32[1,256], index: 4, kind: input, shape index: {}]   ;;  %s714_s6 = inlined_call_operand.vmem [shape: f32[1,128], index: 6, kind: input, shape index: {}]   ;;  %s715_s7 = inlined_call_operand.vmem [shape: f32[8,128], index: 7, kind: output, shape index: {}]  }
   0x1   :  { %v434_v1 = vld [vmem:[%s708_s0] ss:$0 sm:$0xff]  ;;  %494 = vmatprep.subr.bf16.mxu0 %v543_v2  ;;  %v45_v4 = vld [vmem:[%s709_s1 + $0x8] sm:$0xff]  ;;  %496 = vmatprep.mubr.msk.bf16.mxu0 %vm544_vm0, %v543_v2  ;;  %v503_v7 = vld [vmem:[%s710_s3 + $0x74] ss:$8 sps:$4 sm:$0xff]   ;;  %v545_v25 = vmov 0  }
   0x2   :  { %v44_v3 = vld [vmem:[%s709_s1] sm:$0xff]  ;;  %v595_v5 = vshrl.u32 %v32_v0, 7  ;;  %v505_v8 = vld [vmem:[%s710_s3 + $0x70] ss:$8 sps:$4 sm:$0xff]   ;;  %208 = vmatprep.subr.bf16.mxu1 %v503_v7  ;;  %v509_v13 = vld [vmem:[%s710_s3 + $0x54] ss:$8 sps:$4 sm:$0xff]   ;;  %240 = vmatprep.mubr.bf16.mxu1 %v545_v25 }
   0x3   :  { %v46_v6 = vpack.c.bf16 %v45_v4, %v44_v3  ;;  %v506_v9 = vld [vmem:[%s710_s3 + $0x64] ss:$8 sps:$4 sm:$0xff]   ;;  %209 = vmatpush1.bf16.msra.mxu1 %v505_v8  ;;  %v508_v11 = vld [vmem:[%s710_s3 + $0x60] ss:$8 sps:$4 sm:$0xff]   ;;  %v511_v14 = vld [vmem:[%s710_s3 + $0x50] ss:$8 sps:$4 sm:$0xff]  }
   0x4   :  { %vm39_vm1 = vcmp.eq.s32.totalorder %v595_v5, %v434_v1  ;;  %210 = vmatprep.subr.bf16.mxu1 %v506_v9  ;;  %v512_v15 = vld [vmem:[%s710_s3 + $0x44] ss:$8 sps:$4 sm:$0xff]   ;;  %v514_v16 = vld [vmem:[%s710_s3 + $0x40] ss:$8 sps:$4 sm:$0xff]   ;;  %v515_v17 = vld [vmem:[%s710_s3 + $0x34] ss:$8 sps:$4 sm:$0xff]  }
   0x5   :  { %495 = vmatpush3.bf16.msra.mxu0 %v46_v6  ;;  %v435_v10 = vsel %vm39_vm1, 1.0, %v543_v2  ;;  %v517_v18 = vld [vmem:[%s710_s3 + $0x30] ss:$8 sps:$4 sm:$0xff]   ;;  %v518_v19 = vld [vmem:[%s710_s3 + $0x24] ss:$8 sps:$4 sm:$0xff]   ;;  %v120_v49 = vsub.s32 0, %v595_v5 }
   0x6   :  { %v42_v12 = vpack.c.bf16 %v435_v10, %v435_v10  ;;  %v520_v20 = vld [vmem:[%s710_s3 + $0x20] ss:$8 sps:$4 sm:$0xff]   ;;  %v521_v21 = vld [vmem:[%s710_s3 + $0x14] ss:$8 sps:$4 sm:$0xff]   ;;  %v523_v22 = vld [vmem:[%s710_s3 + $0x10] ss:$8 sps:$4 sm:$0xff]  }
   0x7   :  { %211 = vmatpush1.bf16.msra.mxu1 %v508_v11  ;;  %v524_v23 = vld [vmem:[%s710_s3 + $0x4] ss:$8 sps:$4 sm:$0xff]   ;;  %v526_v24 = vld [vmem:[%s710_s3] ss:$8 sps:$4 sm:$0xff]   ;;  %v527_v26 = vld [vmem:[%s711_s5 + $0x78] sm:$0xff]   ;;  %v124_v51 = vsub.s32 1, %v595_v5 }
   0x8   :  { %497 = vmatmul.mubr.msk.bf16.vlgmr.msra.gmra.mxu0 %vm47_vm2, %v42_v12  ;;  %212 = vmatprep.subr.bf16.mxu1 %v509_v13  ;;  %v528_v27 = vld [vmem:[%s711_s5 + $0x38] sm:$0xff]   ;;  %v529_v28 = vld [vmem:[%s711_s5 + $0x70] sm:$0xff]   ;;  %v531_v30 = vld [vmem:[%s711_s5 + $0x68] sm:$0xff]  }
   0x9   :  { %472 = vmatprep.subr.bf16.mxu0 %v527_v26  ;;  %v530_v29 = vld [vmem:[%s711_s5 + $0x30] sm:$0xff]   ;;  %v532_v31 = vld [vmem:[%s711_s5 + $0x28] sm:$0xff]   ;;  %v533_v32 = vld [vmem:[%s711_s5 + $0x60] sm:$0xff]  }
   0xa   :  { %473 = vmatpush3.bf16.msra.mxu0 %v528_v27  ;;  %v534_v33 = vld [vmem:[%s711_s5 + $0x20] sm:$0xff]   ;;  %v535_v34 = vld [vmem:[%s711_s5 + $0x58] sm:$0xff]   ;;  %v537_v36 = vld [vmem:[%s711_s5 + $0x50] sm:$0xff]  }
   0xb   :  { %213 = vmatpush1.bf16.msra.mxu1 %v511_v14  ;;  %474 = vmatprep.subr.bf16.mxu0 %v529_v28  ;;  %v536_v35 = vld [vmem:[%s711_s5 + $0x18] sm:$0xff]   ;;  %v538_v37 = vld [vmem:[%s711_s5 + $0x10] sm:$0xff]   ;;  %v97_v38 = vld [vmem:[%s712_s2] sm:$0xff] }
   0xc   :  { %214 = vmatprep.subr.bf16.mxu1 %v512_v15  ;;  %v539_v45 = vld [vmem:[%s711_s5 + $0x48] sm:$0xff]   ;;  %v541_v47 = vld [vmem:[%s711_s5 + $0x40] sm:$0xff]  }
   0xd   :  { %v540_v46 = vld [vmem:[%s711_s5 + $0x8] sm:$0xff]   ;;  %v542_v48 = vld [vmem:[%s711_s5] sm:$0xff]  }
   0xe   :  { %475 = vmatpush3.bf16.msra.mxu0 %v530_v29  ;;  %v116_v50 = vld [vmem:[%s713_s4] sm:$0x3] }
   0xf   :  { %215 = vmatpush1.bf16.msra.mxu1 %v514_v16  ;;  %476 = vmatprep.subr.bf16.mxu0 %v531_v30  ;;  %v121_v52 = vrot.slane %v116_v50, %v120_v49  ;;  %v125_v53 = vrot.slane %v116_v50, %v124_v51  ;;  %v453_v1 = vld [vmem:[%s714_s6] ss:$0 sm:$0xff] }
  0x10   :  { %216 = vmatprep.subr.bf16.mxu1 %v515_v17 }
  0x12   :  { %477 = vmatpush3.bf16.msra.mxu0 %v532_v31 }
  0x13   :  { %217 = vmatpush1.bf16.msra.mxu1 %v517_v18  ;;  %478 = vmatprep.subr.bf16.mxu0 %v533_v32 }
  0x14   :  { %218 = vmatprep.subr.bf16.mxu1 %v518_v19 }
  0x16   :  { %479 = vmatpush3.bf16.msra.mxu0 %v534_v33 }
  0x17   :  { %219 = vmatpush1.bf16.msra.mxu1 %v520_v20  ;;  %480 = vmatprep.subr.bf16.mxu0 %v535_v34 }
  0x18   :  { %220 = vmatprep.subr.bf16.mxu1 %v521_v21 }
  0x1a   :  { %481 = vmatpush3.bf16.msra.mxu0 %v536_v35 }
  0x1b   :  { %221 = vmatpush1.bf16.msra.mxu1 %v523_v22  ;;  %482 = vmatprep.subr.bf16.mxu0 %v537_v36 }
  0x1c   :  { %222 = vmatprep.subr.bf16.mxu1 %v524_v23 }
  0x1e   :  { %483 = vmatpush3.bf16.msra.mxu0 %v538_v37 }
  0x1f   :  { %223 = vmatpush1.bf16.msra.mxu1 %v526_v24  ;;  %484 = vmatprep.subr.bf16.mxu0 %v539_v45 }
  0x22   :  { %485 = vmatpush3.bf16.msra.mxu0 %v540_v46 }
  0x23   :  { %486 = vmatprep.subr.bf16.mxu0 %v541_v47 }
  0x26   :  { %487 = vmatpush3.bf16.msra.mxu0 %v542_v48 }
  0xc8   :  { %v85_v39 = vpop.f32.mrf.mxu0 }
  0xc9   :  { %v98_v40 = vadd.f32 %v97_v38, %v85_v39 }
  0xca   :  { %v498_v41 = vpop.f32.mrf.mxu0 }
  0xcb   :  { %v99_v42 = vpack.c.bf16 %v98_v40, %v98_v40 }
  0xcc   :  { %v88_v43 = vpop.f32.mrf.mxu0 }
  0xcd   :  { %241 = vmatmul.mubr.bf16.vlgmr.msra.gmra.mxu1 %v99_v42 }
  0xce   :  { %v499_v44 = vpop.f32.mrf.mxu0 }
 0x18d   :  { %v242_v54 = vpop.f32.mrf.mxu1 }
 0x18e   :  { %v243_v55 = vadd.f32 %v242_v54, %v121_v52 }
 0x18f   :  { %v244_v56 = vpop.f32.mrf.mxu1 }
 0x190   :  { %v245_v57 = vadd.f32 %v244_v56, %v125_v53  ;;  %v249_v58 = vmax.f32 %v243_v55, 0.0 }
 0x191   :  { %v246_v59 = vpop.f32.mrf.mxu1 }
 0x192   :  { %v250_v60 = vmax.f32 %v245_v57, 0.0  ;;  %v251_v63 = vpack.c.bf16 %v249_v58, %v249_v58 }
 0x193   :  { %v247_v61 = vpop.f32.mrf.mxu1 }
 0x194   :  { %v252_v62 = vpack.c.bf16 %v250_v60, %v250_v60 }
 0x196   :  { %420 = vmatprep.mubr.bf16.mxu0 %v252_v62 }
 0x197   :  { %421 = vmatmul.mubr.bf16.vlgmr.msra.gmra.mxu0 %v251_v63 }
 0x257   :  { %v488_v0 = vpop.f32.mrf.mxu0 }
 0x259   :  { %v489_v2 = vpop.f32.mrf.mxu0 }
 0x25a   :  { %v490_v3 = vadd.f32 %v489_v2, %v488_v0 }
 0x25b   :  { %v491_v4 = vpop.f32.mrf.mxu0 }
 0x25c   :  { %v423_v5 = vadd.f32 %v490_v3, %v453_v1 }
 0x25d   :  { %v492_v6 = vpop.f32.mrf.mxu0 }
 0x25e   :  { %v428_v7 = vmax.f32 %v423_v5, 0.0 }
 0x260   :  { %429 = vst [vmem:[%s715_s7] sm:$0xff] %v428_v7 }

</bundles_post_ra>
